<compile_context>
chip_gen: v7x
topology: tpu7x:2x2x1
jax: 0.10.0
libtpu: 0.0.40
codegen_flags: <defaults>
</compile_context>

<pallas_src>
import functools
import math

import jax
import jax.numpy as jnp
from jax.experimental import pallas as pl
from jax.experimental.pallas import tpu as pltpu

K = 16          # in_features
N = 32          # out_features
PACK = 8        # rows packed per lane-dense row (8*K = 128 lanes)
TM_MAX = 512    # max packed-row tile (x tile 256 KiB + out tile 512 KiB, f32)
GRID_TARGET = 8 # aim for >= 8 grid steps so DMA prologue/epilogue is hidden


def _linear_leaky_kernel(x_ref, w_ref, b_ref, o_ref, *, negative_slope):
    # x_ref: (tm, 128)  w_ref: (128, 256)  b_ref: (1, 256)  o_ref: (tm, 256)
    v1 = jnp.dot(x_ref[...], w_ref[...],
                 preferred_element_type=jnp.float32,
                 precision=jax.lax.Precision.HIGHEST)
    v1 = v1 + b_ref[...]                                   # (tm,256)+(1,256)
    ns = float(negative_slope)
    if ns == 1.0:                       # identity LeakyReLU: skip the op
        out = v1
    elif 0.0 <= ns <= 1.0:              # mul+max instead of cmp+select
        out = jnp.maximum(v1, v1 * ns)
    else:
        out = jnp.where(v1 > 0, v1, v1 * ns)
    o_ref[...] = out.astype(o_ref.dtype)


def _round_up(a, b):
    return ((a + b - 1) // b) * b


def _choose_tiling(m_rows):
    """Pick (tm, grid, mp_pad) for M original rows."""
    mp = max(1, (m_rows + PACK - 1) // PACK)      # packed rows needed
    mp8 = _round_up(mp, 8)                        # sublane-aligned packed rows
    tm = min(TM_MAX, _round_up((mp8 + GRID_TARGET - 1) // GRID_TARGET, 8))
    grid = (mp8 + tm - 1) // tm
    if grid > 1 and grid % 2 == 1:
        grid += 1                                 # even split for v7x megacore
    mp_pad = grid * tm
    return tm, grid, mp_pad


def pack_params(weight, bias, dtype=jnp.float32):
    """weight: (N, K) PyTorch layout; bias: (N,).  Call once, reuse."""
    assert weight.shape == (N, K) and bias.shape == (N,)
    w_kn = jnp.asarray(weight, dtype).T                       # (K, N)
    eye = jnp.eye(PACK, dtype=dtype)
    w_bd = jnp.einsum("pq,kn->pkqn", eye, w_kn).reshape(PACK * K, PACK * N)
    b_tiled = jnp.tile(jnp.asarray(bias, dtype), PACK).reshape(1, PACK * N)
    return w_bd, b_tiled


def linear_leaky(x, w_bd, b_tiled, negative_slope):
    """x: (..., K); w_bd/b_tiled from pack_params."""
    *lead, k_in = x.shape
    assert k_in == K
    M = math.prod(lead) if lead else 1

    tm, grid, mp_pad = _choose_tiling(M)
    m_pad = mp_pad * PACK

    x2d = x.reshape(M, K)
    if m_pad != M:
        x2d = jnp.pad(x2d, ((0, m_pad - M), (0, 0)))
    x_packed = x2d.reshape(mp_pad, PACK * K)                  # (mp_pad, 128)

    kernel = functools.partial(_linear_leaky_kernel,
                               negative_slope=float(negative_slope))

    cost = pl.CostEstimate(
        flops=2 * mp_pad * (PACK * K) * (PACK * N),
        transcendentals=0,
        bytes_accessed=4 * (mp_pad * PACK * K + (PACK * K) * (PACK * N)
                            + mp_pad * PACK * N + PACK * N),
    )

    out_packed = pl.pallas_call(
        kernel,
        out_shape=jax.ShapeDtypeStruct((mp_pad, PACK * N), x.dtype),
        grid=(grid,),
        in_specs=[
            pl.BlockSpec((tm, PACK * K), lambda i: (i, 0)),        # x tiles
            pl.BlockSpec((PACK * K, PACK * N), lambda i: (0, 0)),  # weight (resident)
            pl.BlockSpec((1, PACK * N), lambda i: (0, 0)),         # bias (resident)
        ],
        out_specs=pl.BlockSpec((tm, PACK * N), lambda i: (i, 0)),
        compiler_params=pltpu.CompilerParams(
            dimension_semantics=("parallel",),      # megacore shard on v7x
            vmem_limit_bytes=32 * 1024 * 1024,      # portable across v5e/v6e/v7x
        ),
        cost_estimate=cost,
    )(x_packed, w_bd, b_tiled)

    out = out_packed.reshape(m_pad, N)
    if m_pad != M:
        out = out[:M]
    return out.reshape(*lead, N)


if __name__ == "__main__":
    key = jax.random.PRNGKey(0)
    kx, kw, kb, kx2 = jax.random.split(key, 4)

    # PyTorch-style Linear(16, 32) init: uniform(-1/sqrt(K), 1/sqrt(K))
    bound = 1.0 / (K ** 0.5)
    weight = jax.random.uniform(kw, (N, K), minval=-bound, maxval=bound,
                                dtype=jnp.float32)
    bias = jax.random.uniform(kb, (N,), minval=-bound, maxval=bound,
                              dtype=jnp.float32)

    # Pack the weight/bias once; reuse for every call.
    w_bd, b_tiled = pack_params(weight, bias)

    def ref_fn(x, slope):
        y = jnp.einsum("...k,nk->...n", x, weight,
                       precision=jax.lax.Precision.HIGHEST) + bias
        return jnp.where(y > 0, y, y * slope)

    # 1) Shape implied by the module's forward (channels-last view of the
    #    original (1,16,32,32) input): M = 1024, fully aligned -> no pad/slice,
    #    grid of 8 steps.  Module-default negative_slope = 1.
    x_small = jax.random.normal(kx, (1, 32, 32, K), dtype=jnp.float32)
    out_small = linear_leaky(x_small, w_bd, b_tiled, 1.0)
    jax.block_until_ready(out_small)
    assert out_small.shape == (1, 32, 32, N)
    assert jnp.allclose(out_small, ref_fn(x_small, 1.0), atol=1e-5, rtol=1e-5)

    # 2) Unaligned M exercising the pad/slice tail path, multi-step even grid,
    #    and the negative branch (slope = 0.01).
    x_rag = jax.random.normal(kx2, (4, 200, K), dtype=jnp.float32)
    out_rag = linear_leaky(x_rag, w_bd, b_tiled, 0.01)
    jax.block_until_ready(out_rag)
    assert out_rag.shape == (4, 200, N)
    assert jnp.allclose(out_rag, ref_fn(x_rag, 0.01), atol=1e-5, rtol=1e-5)

    print("KERNEL_OK")
</pallas_src>

<mosaic_0001>
module attributes {stable_mosaic.version = 11 : i64} {
  func.func @_linear_leaky_kernel(%arg0: i32, %arg1: memref<16x128xf32, #tpu.memory_space<vmem>>, %arg2: memref<128x256xf32, #tpu.memory_space<vmem>>, %arg3: memref<1x256xf32, #tpu.memory_space<vmem>>, %arg4: memref<16x256xf32, #tpu.memory_space<vmem>>) attributes {dimension_semantics = [#tpu.dimension_semantics<parallel>], iteration_bounds = array<i64: 8>, scalar_prefetch = 0 : i64, scratch_operands = 0 : i64, tpu.core_type = #tpu.core_type<tc>, window_params = [{transform_indices = @transform_0, window_bounds = array<i64: 16, 128>}, {pipeline_mode = #tpu.pipeline_mode<synchronous>, transform_indices = @transform_1, window_bounds = array<i64: 128, 256>}, {pipeline_mode = #tpu.pipeline_mode<synchronous>, transform_indices = @transform_2, window_bounds = array<i64: 1, 256>}, {transform_indices = @transform_3, window_bounds = array<i64: 16, 256>}]} {
    %c0 = arith.constant 0 : index
    %c0_0 = arith.constant 0 : index
    %0 = vector.load %arg1[%c0, %c0_0] : memref<16x128xf32, #tpu.memory_space<vmem>>, vector<16x128xf32>
    %c0_1 = arith.constant 0 : index
    %c0_2 = arith.constant 0 : index
    %1 = vector.load %arg2[%c0_1, %c0_2] : memref<128x256xf32, #tpu.memory_space<vmem>>, vector<128x256xf32>
    %cst = arith.constant dense<0.000000e+00> : vector<16x256xf32>
    %2 = tpu.matmul %0, %1, %cst {dimension_numbers = #tpu.dot_dimension_numbers<[1], [0], [0], [1], [0, 0, 1, 1], [], []>, precision = #tpu.contract_precision<fp32>} : vector<16x128xf32>, vector<128x256xf32>, vector<16x256xf32> -> vector<16x256xf32>
    %c0_3 = arith.constant 0 : index
    %c0_4 = arith.constant 0 : index
    %3 = vector.load %arg3[%c0_3, %c0_4] : memref<1x256xf32, #tpu.memory_space<vmem>>, vector<1x256xf32>
    %4 = vector.broadcast %3 : vector<1x256xf32> to vector<16x256xf32>
    %5 = arith.addf %2, %4 : vector<16x256xf32>
    %c0_5 = arith.constant 0 : index
    %c0_6 = arith.constant 0 : index
    %6 = vector.load %arg4[%c0_5, %c0_6] : memref<16x256xf32, #tpu.memory_space<vmem>>, vector<16x256xf32>
    tpu.vector_store %arg4[%c0_5, %c0_6], %5 {strides = array<i32>} : memref<16x256xf32, #tpu.memory_space<vmem>>, vector<16x256xf32>,
    return
  }
  func.func @transform_0(%arg0: i32) -> (i32, i32) {
    %c0_i32 = arith.constant 0 : i32
    %c0_i32_0 = arith.constant 0 : i32
    return %arg0, %c0_i32 : i32, i32
  }
  func.func @transform_1(%arg0: i32) -> (i32, i32) {
    %c0_i32 = arith.constant 0 : i32
    %c0_i32_0 = arith.constant 0 : i32
    %c0_i32_1 = arith.constant 0 : i32
    return %c0_i32, %c0_i32_0 : i32, i32
  }
  func.func @transform_2(%arg0: i32) -> (i32, i32) {
    %c0_i32 = arith.constant 0 : i32
    %c0_i32_0 = arith.constant 0 : i32
    %c0_i32_1 = arith.constant 0 : i32
    return %c0_i32, %c0_i32_0 : i32, i32
  }
  func.func @transform_3(%arg0: i32) -> (i32, i32) {
    %c0_i32 = arith.constant 0 : i32
    %c0_i32_0 = arith.constant 0 : i32
    return %arg0, %c0_i32 : i32, i32
  }
}

</mosaic_0001>

<bundles_post_ra>
// kernel: tpu_custom_call.1
= control target key start
LH: loop header
LB: loop body
LE: loop exit
PB: predicated region body
PF: predicated region fallthrough
CT: control target
= control target key end

     0   :  { %8 = vsyncpa [#allocation3], 0  ;;  %s2192_s0 = inlined_call_operand.hbm [shape: f32[128,128], index: 0, kind: input, shape index: {}]   ;;  %s2193_s1 = inlined_call_operand.hbm [shape: f32[128,256], index: 1, kind: input, shape index: {}]   ;;  %s2194_s2 = inlined_call_operand.vmem [shape: f32[1,256], index: 2, kind: input, shape index: {}]   ;;  %s2195_s3 = inlined_call_operand.hbm [shape: f32[128,256], index: 3, kind: output, shape index: {}]  }
   0x1   :  { %10 = vsyncpa [#allocation3 + $0x1], 0 }
   0x2   :  { %11 = vsyncpa [#allocation6], 0 }
   0x3   :  { %12 = vsyncpa [#allocation4], 0 }
   0x4   :  { %14 = vsyncpa [#allocation4 + $0x1], 0  ;;  %s1718_s12 = smov 0   ;;  %s1720_s13 = smov 0  }
   0x5   :  { %s1722_s14 = smov 0   ;;  %s1724_s15 = smov 0  }
   0x6 LB: > { %s1739_s16 = sadd.s32 4294967295, %s1686_s15   ;;  %s1258_s17 = sadd.s32 4294967294, %s1686_s15   ;;  %s1686_s15 = sphi %s1724_s15, %s2290_s15   ;;  %s1682_s14 = sphi %s1722_s14, %s2289_s14   ;;  %s1678_s13 = sphi %s1720_s13, %s2288_s13   ;;  %s1674_s12 = sphi %s1718_s12, %s2287_s12  }
   0x7   : > { %p40_p0 = scmp.ne.s32.totalorder %s1678_s13, %s1674_s12  ;;  %p2196_p1 = scmp.eq.s32.totalorder %s1739_s16, 0 }
   0x8   : > { %p112_p3 = scmp.eq.s32.totalorder %s1258_s17, 7  ;;  %p1259_p5 = scmp.ge.s32.totalorder %s1686_s15, 1 }
   0x9   : > { %p1748_p4 = por %p2196_p1, %p40_p0  ;;  %p119_p7 = scmp.lt.s32.totalorder %s1686_s15, 9 }
   0xa   : > { %p1753_p6 = por %p112_p3, %p40_p0  ;;  %s1688_s21 = smov [#allocation5]  }
   0xb   : > { %s2226_s18 = scalar_select %p1748_p4, 1, 0 }
   0xc   : > { %s2227_s19 = scalar_select %p1753_p6, 1, 0 }
   0xd   : > { %p1758_p8 = pnand %p1259_p5, %p119_p7  ;;  %s131_s22 = sshll.u32 %s1688_s21, 4  ;;  %s132_s22 = int_to_ptr.vmem [resolvable:$true] %s131_s22 }
   0xe   : > { %s1771_s24 = sadd.s32 1, %s1686_s15   ;;  %s27_s25 = sadd.s32 1, %s1682_s14 }
   0xf   : > { %s2228_s20 = scalar_select %p1758_p8, 1, 0 }
  0x10   : > { %p1502_p9 = pneg %p1758_p8  ;;  %s24_s26 = ssub.s32 %s1686_s15, %s1771_s24 }
  0x11   : > { %s1558_s29 = scalar_lea.hbm %s2193_s1, 4096 }
  0x12   : > { %p1766_p10 = pnand %p1502_p9, %p2196_p1  ;;  %p1559_p11 = scmp.ne.s32.totalorder %s2193_s1, %s1558_s29 }
  0x13   : > { %p1565_p3 = scmp.lt.u32.totalorder %s1558_s29, %s2193_s1 }
  0x14   : > { %p1560_p12 = pneg %p1766_p10 }
  0x16   : > { %p1561_p13 = pnand %p1560_p12, %p1559_p11 }
  0x18   : > { %p1562_p0 = pneg %p1561_p13 }
  0x1a   : > { %p1567_p5 = pnand %p1565_p3, %p1562_p0 }
  0x1c   : > { %1570 = shalt.err (!%p1567_p5)
}
  0x1d   : > { %s1571_s7 = scalar_lea.vmem %s132_s22, 4096  ;;  %p1579_p2 = scmp.lt.s32.totalorder %s132_s22, %s132_s22 }
  0x1e   : > { %p1572_p7 = scmp.ne.s32.totalorder %s132_s22, %s1571_s7  ;;  %p1580_p6 = scmp.lt.s32.totalorder %s1571_s7, %s1571_s7 }
  0x20   : > { %p1574_p9 = pnand %p1572_p7, %p1560_p12  ;;  %p1581_p4 = por %p1580_p6, %p1579_p2 }
  0x22   : > { %p1575_p1 = pneg %p1574_p9 }
  0x24   : > { %p1582_p8 = pnand %p1581_p4, %p1575_p1 }
  0x26   : > { %1585 = shalt.err (!%p1582_p8)
}
  0x27   : > { %s1689_s8 = smov 256   ;;  %s1690_s9 = smov 16  }
  0x28   : > { %1505 = dma.hbm_to_vmem [thread:$0]  (!%p1766_p10), %s2193_s1, 4096, %s132_s22, [#allocation6], %s1689_s8, %s1689_s8, %s1690_s9  }
  0x29   : > { %p25_p11 = scmp.eq.s32.totalorder %s24_s26, 0  ;;  %p34_p2 = scmp.ne.s32.totalorder %s1682_s14, %s1678_s13 }
  0x2a   : > { %p35_p1 = scmp.eq.s32.totalorder %s1686_s15, 0  ;;  %p1515_p4 = scmp.lt.s32.totalorder %s1686_s15, 8 }
  0x2b   : > { %s1797_s17 = scalar_select %p25_p11, %s1682_s14, %s27_s25  }
  0x2c   : > { %p36_p6 = por %p35_p1, %p34_p2  ;;  %p2230_p8 = scmp.eq.s32.totalorder %s1739_s16, 7 }
  0x2d   : > { %s148_s27 = sand.u32 1, %s1682_s14   ;;  %s1275_s28 = sshll.u32 %s1686_s15, 8 }
  0x2e   : > { %p1801_p12 = por %p2230_p8, %p34_p2  ;;  %s1262_s29 = sshll.u32 %s148_s27, 4 }
  0x2f   : > { %s1810_s4 = scalar_lea.hbm %s2192_s0, %s1275_s28  ;;  %s152_s22 = scalar_lea.vmem [#allocation2], %s1262_s29 }
  0x30   : > { %s159_s25 = sshll.u32 %s152_s22, 4  ;;  %p1812_p10 = pnand %p1515_p4, %p36_p6  ;;  %s1816_s25 = int_to_ptr.vmem [resolvable:$true] %s159_s25 }
  0x31   : > { %s1818_s5 = scalar_lea.sflag [#allocation3], %s148_s27  ;;  %s1586_s6 = scalar_lea.hbm %s1810_s4, 256 }
  0x32   : > { %p1587_p13 = scmp.ne.s32.totalorder %s1810_s4, %s1586_s6  ;;  %p1588_p0 = pneg %p1812_p10 }
  0x33   : > { %s1591_s9 = scalar_lea.hbm %s2192_s0, 2048  ;;  %p1592_p7 = scmp.lt.u32.totalorder %s1810_s4, %s2192_s0 }
  0x34   : > { %p1589_p3 = pnand %p1588_p0, %p1587_p13  ;;  %p1593_p9 = scmp.lt.u32.totalorder %s1591_s9, %s1586_s6 }
  0x35   : > { %p1595_p2 = scmp.lt.u32.totalorder %s1586_s6, %s1810_s4 }
  0x36   : > { %p1590_p5 = pneg %p1589_p3  ;;  %p1594_p11 = por %p1593_p9, %p1592_p7 }
  0x38   : > { %p1596_p1 = por %p1595_p2, %p1594_p11 }
  0x3a   : > { %p1597_p4 = pnand %p1596_p1, %p1590_p5 }
  0x3c   : > { %1600 = shalt.err (!%p1597_p4)
}
  0x3d   : > { %s1601_s27 = scalar_lea.vmem %s1816_s25, 256  ;;  %s1691_s28 = smov [#allocation2]  }
  0x3e   : > { %p1602_p6 = scmp.ne.s32.totalorder %s1816_s25, %s1601_s27  ;;  %s1606_s29 = sshll.u32 %s1691_s28, 4  ;;  %s1607_s29 = int_to_ptr.vmem [resolvable:$false] %s1606_s29 }
  0x3f   : > { %s1608_s23 = scalar_lea.vmem %s1607_s29, 512  ;;  %p1609_p3 = scmp.lt.s32.totalorder %s1816_s25, %s1607_s29 }
  0x40   : > { %p1604_p8 = pnand %p1602_p6, %p1588_p0  ;;  %p1610_p7 = scmp.lt.s32.totalorder %s1608_s23, %s1601_s27 }
  0x42   : > { %p1605_p13 = pneg %p1604_p8  ;;  %p1611_p9 = por %p1610_p7, %p1609_p3 }
  0x44   : > { %p1612_p11 = pnand %p1611_p9, %p1605_p13 }
  0x46   : > { %1615 = shalt.err (!%p1612_p11)
}
  0x47   : > { %s1692_s30 = smov 128   ;;  %s1693_s22 = smov 8  }
  0x48   : > { %1509 = dma.hbm_to_vmem [thread:$0]  (!%p1812_p10), %s1810_s4, 256, %s1816_s25, %s1818_s5, %s1692_s30, %s1692_s30, %s1693_s22  }
  0x49   : > { %p2233_p0 = scmp.ne.s32.totalorder %s2228_s20, 0 }
  0x4b   : > { %171 = sbr.rel (%p2233_p0) target bundleno = 426 (0x1aa), region = 32 }
  0x52   : > { %s1849_s6 = sand.u32 1, %s1678_s13   ;;  %p2234_p5 = scmp.ne.s32.totalorder %s2226_s18, 0 }
  0x53   : > { %s1266_s7 = sshll.u32 %s1849_s6, 4  ;;  %s174_s8 = scalar_lea.sflag [#allocation3], %s1849_s6 }
  0x54   : > { %s1853_s9 = scalar_lea.vmem [#allocation2], %s1266_s7 }
  0x55   : > { %1661 = dma.done.wait (%p2234_p5), %s174_s8, 256  }
  0x56   : > { %1663 = vsyncadd (%p2234_p5), %s174_s8, 4294967040  ;;  %p2235_p10 = scmp.eq.s32.totalorder %s1739_s16, 0 }
  0x58   : > { %1665 = dma.done.wait (%p2235_p10), [#allocation6], 4096   ;;  %p2236_p2 = pmov %p2235_p10 }
  0x59   : > { %v2199_v0 = vmov 0.0   ;;  %v209_v1 = vld [vmem:[#allocation5 + $0x8] sm:$0xff]  ;;  %v211_v2 = vld [vmem:[#allocation5 + $0x18] sm:$0xff]  ;;  %v208_v3 = vld [vmem:[#allocation5] sm:$0xff]  ;;  %s1268_s4 = sshll.u32 %s1849_s6, 5  ;;  %s1277_s5 = sshll.u32 %s1739_s16, 9 }
  0x5a   : > { %1667 = vsyncadd (%p2236_p2), [#allocation6], 4294963200  ;;  %348 = vmatprep.mubr.f32.mxu1 %v2199_v0  ;;  %851 = vmatprep.mubr.f32.mxu0 %v2199_v0  ;;  %v252_v4 = vand.u32 4294901760, %v209_v1  ;;  %v256_v5 = vand.u32 4294901760, %v211_v2  ;;  %v210_v6 = vld [vmem:[#allocation5 + $0x10] sm:$0xff]  ;;  %v254_v7 = vand.u32 4294901760, %v208_v3  ;;  %s2149_s27 = scalar_lea.hbm %s2195_s3, %s1277_s5 }
  0x5b   : > { %v213_v8 = vld [vmem:[#allocation5 + $0x28] sm:$0xff]  ;;  %v215_v9 = vld [vmem:[#allocation5 + $0x38] sm:$0xff]  ;;  %v258_v10 = vand.u32 4294901760, %v210_v6  ;;  %v212_v13 = vld [vmem:[#allocation5 + $0x20] sm:$0xff]  ;;  %s203_s25 = scalar_lea.vmem [#allocation7], %s1268_s4  ;;  %s1161_s16 = scalar_lea.sflag [#allocation4], %s1849_s6 }
  0x5c   : > { %v260_v11 = vand.u32 4294901760, %v213_v8  ;;  %v264_v12 = vand.u32 4294901760, %v215_v9  ;;  %v214_v14 = vld [vmem:[#allocation5 + $0x30] sm:$0xff]  ;;  %v217_v15 = vld [vmem:[#allocation5 + $0x48] sm:$0xff]  ;;  %v1865_v16 = vpack.c.bf16 %v256_v5, %v252_v4  ;;  %v219_v17 = vld [vmem:[#allocation5 + $0x58] sm:$0xff]  ;;  %v1867_v20 = vsub.f32 %v209_v1, %v252_v4  ;;  %s1175_s26 = sshll.u32 %s203_s25, 4  ;;  %s2144_s26 = int_to_ptr.vmem [resolvable:$true] %s1175_s26 }
  0x5d   : > { %v216_v18 = vld [vmem:[#allocation5 + $0x40] sm:$0xff]  ;;  %v218_v19 = vld [vmem:[#allocation5 + $0x50] sm:$0xff]  ;;  %v1869_v21 = vpack.c.bf16 %v258_v10, %v254_v7  ;;  %v221_v23 = vld [vmem:[#allocation5 + $0x68] sm:$0xff]  ;;  %v1874_v25 = vsub.f32 %v211_v2, %v256_v5  ;;  %v262_v26 = vand.u32 4294901760, %v212_v13  ;;  %v266_v27 = vand.u32 4294901760, %v214_v14  ;;  %s1616_s28 = scalar_lea.vmem %s2144_s26, 512 }
  0x5e   : > { %v1871_v22 = vpack.c.bf16 %v264_v12, %v260_v11  ;;  %v223_v24 = vld [vmem:[#allocation5 + $0x78] sm:$0xff]  ;;  %1279 = vmatprep.subr.bf16.mxu1 %v1865_v16  ;;  %1375 = vmatprep.subr.bf16.mxu0 %v1865_v16  ;;  %v268_v28 = vand.u32 4294901760, %v217_v15  ;;  %v1878_v29 = vsub.f32 %v208_v3, %v254_v7  ;;  %v272_v30 = vand.u32 4294901760, %v219_v17  ;;  %v220_v37 = vld [vmem:[#allocation5 + $0x60] sm:$0xff]  ;;  %v222_v38 = vld [vmem:[#allocation5 + $0x70] sm:$0xff]  ;;  %p1617_p1 = scmp.ne.s32.totalorder %s2144_s26, %s1616_s28  ;;  %s1695_s29 = smov [#allocation7]  }
  0x5f   : > { %2237 = vst [vmem:[#allocation11_spill] sm:$0xff] %v1869_v21  ;;  %1281 = vmatpush1.bf16.msra.mxu1 %v1869_v21  ;;  %1377 = vmatpush1.bf16.msra.mxu0 %v1869_v21  ;;  %v270_v31 = vand.u32 4294901760, %v216_v18  ;;  %v274_v32 = vand.u32 4294901760, %v218_v19  ;;  %v1881_v33 = vsub.f32 %v210_v6, %v258_v10  ;;  %v1885_v34 = vpack.c.bf16 %v266_v27, %v262_v26  ;;  %v225_v39 = vld [vmem:[#allocation5 + $0x88] sm:$0xff]  ;;  %v227_v44 = vld [vmem:[#allocation5 + $0x98] sm:$0xff]  ;;  %v224_v45 = vld [vmem:[#allocation5 + $0x80] sm:$0xff] }
  0x60   : > { %2238 = vst [vmem:[#allocation12_spill] sm:$0xff] %v1871_v22  ;;  %1283 = vmatprep.subr.bf16.mxu1 %v1871_v22  ;;  %1379 = vmatprep.subr.bf16.mxu0 %v1871_v22  ;;  %v276_v35 = vand.u32 4294901760, %v221_v23  ;;  %v280_v36 = vand.u32 4294901760, %v223_v24  ;;  %v1887_v40 = vsub.f32 %v213_v8, %v260_v11  ;;  %v1889_v41 = vsub.f32 %v215_v9, %v264_v12  ;;  %v226_v46 = vld [vmem:[#allocation5 + $0x90] sm:$0xff]  ;;  %v229_v51 = vld [vmem:[#allocation5 + $0xa8] sm:$0xff]  ;;  %v231_v60 = vld [vmem:[#allocation5 + $0xb8] sm:$0xff]  ;;  %p1618_p4 = pnand %p1617_p1, %p1801_p12 }
  0x61   : > { %2239 = vst [vmem:[#allocation13_spill] sm:$0xff] %v1885_v34  ;;  %v1891_v42 = vsub.f32 %v212_v13, %v262_v26  ;;  %v1893_v43 = vpack.c.bf16 %v272_v30, %v268_v28  ;;  %v1895_v47 = vsub.f32 %v214_v14, %v266_v27  ;;  %v1897_v48 = vsub.f32 %v217_v15, %v268_v28  ;;  %v228_v61 = vld [vmem:[#allocation5 + $0xa0] sm:$0xff]  ;;  %v230_v3 = vld [vmem:[#allocation5 + $0xb0] sm:$0xff]  ;;  %v233_v4 = vld [vmem:[#allocation5 + $0xc8] sm:$0xff]  ;;  %s1620_s23 = sshll.u32 %s1695_s29, 4  ;;  %s1621_s23 = int_to_ptr.vmem [resolvable:$false] %s1620_s23 }
  0x62   : > { %v1899_v49 = vsub.f32 %v219_v17, %v272_v30  ;;  %v1901_v50 = vpack.c.bf16 %v274_v32, %v270_v31  ;;  %v1905_v52 = vsub.f32 %v216_v18, %v270_v31  ;;  %v278_v53 = vand.u32 4294901760, %v220_v37  ;;  %v235_v5 = vld [vmem:[#allocation5 + $0xd8] sm:$0xff]  ;;  %v232_v10 = vld [vmem:[#allocation5 + $0xc0] sm:$0xff]  ;;  %v234_v15 = vld [vmem:[#allocation5 + $0xd0] sm:$0xff]  ;;  %p1619_p6 = pneg %p1618_p4  ;;  %s1622_s30 = scalar_lea.vmem %s1621_s23, 1024 }
  0x63   : > { %2240 = vst [vmem:[#allocation14_spill] sm:$0xff] %v1891_v42  ;;  %2241 = vst [vmem:[#allocation15_spill] sm:$0xff] %v1893_v43  ;;  %1285 = vmatpush1.bf16.msra.mxu1 %v1885_v34  ;;  %1381 = vmatpush1.bf16.msra.mxu0 %v1885_v34  ;;  %v282_v54 = vand.u32 4294901760, %v222_v38  ;;  %v284_v55 = vand.u32 4294901760, %v225_v39  ;;  %v1909_v56 = vpack.c.bf16 %v280_v36, %v276_v35  ;;  %v288_v57 = vand.u32 4294901760, %v227_v44  ;;  %v237_v30 = vld [vmem:[#allocation5 + $0xe8] sm:$0xff]  ;;  %p1623_p8 = scmp.lt.s32.totalorder %s2144_s26, %s1621_s23  ;;  %p1624_p13 = scmp.lt.s32.totalorder %s1622_s30, %s1616_s28 }
  0x64   : > { %2242 = vst [vmem:[#allocation16_spill] sm:$0xff] %v1895_v47  ;;  %2243 = vst [vmem:[#allocation17_spill] sm:$0xff] %v1901_v50  ;;  %1287 = vmatprep.subr.bf16.mxu1 %v1893_v43  ;;  %1383 = vmatprep.subr.bf16.mxu0 %v1893_v43  ;;  %v286_v58 = vand.u32 4294901760, %v224_v45  ;;  %v290_v59 = vand.u32 4294901760, %v226_v46  ;;  %v1911_v62 = vsub.f32 %v218_v19, %v274_v32  ;;  %v292_v2 = vand.u32 4294901760, %v229_v51  ;;  %v239_v31 = vld [vmem:[#allocation5 + $0xf8] sm:$0xff] }
  0x65   : > { %2244 = vst [vmem:[#allocation18_spill] sm:$0xff] %v1905_v52  ;;  %2245 = vst [vmem:[#allocation19_spill] sm:$0xff] %v1909_v56  ;;  %v1913_v63 = vsub.f32 %v221_v23, %v276_v35  ;;  %v1915_v1 = vsub.f32 %v223_v24, %v280_v36  ;;  %v1917_v6 = vpack.c.bf16 %v282_v54, %v278_v53  ;;  %v296_v13 = vand.u32 4294901760, %v231_v60  ;;  %v236_v32 = vld [vmem:[#allocation5 + $0xe0] sm:$0xff]  ;;  %p1625_p3 = por %p1624_p13, %p1623_p8 }
  0x66   : > { %2246 = vst [vmem:[#allocation20_spill] sm:$0xff] %v1911_v62  ;;  %v1919_v7 = vsub.f32 %v220_v37, %v278_v53  ;;  %v1921_v8 = vsub.f32 %v222_v38, %v282_v54  ;;  %v1923_v9 = vsub.f32 %v225_v39, %v284_v55  ;;  %v1927_v11 = vpack.c.bf16 %v288_v57, %v284_v55  ;;  %v238_v39 = vld [vmem:[#allocation5 + $0xf0] sm:$0xff] }
  0x67   : > { %2247 = vst [vmem:[#allocation21_spill] sm:$0xff] %v1917_v6  ;;  %1289 = vmatpush1.bf16.msra.mxu1 %v1901_v50  ;;  %1385 = vmatpush1.bf16.msra.mxu0 %v1901_v50  ;;  %v1929_v12 = vsub.f32 %v227_v44, %v288_v57  ;;  %v294_v14 = vand.u32 4294901760, %v228_v61  ;;  %v1933_v17 = vpack.c.bf16 %v290_v59, %v286_v58  ;;  %v298_v18 = vand.u32 4294901760, %v230_v3  ;;  %v206_v44 = vld [vmem:[%s1853_s9] sm:$0xff]  ;;  %p1626_p7 = pnand %p1625_p3, %p1619_p6 }
  0x68   : > { %2248 = vst [vmem:[#allocation22_spill] sm:$0xff] %v1927_v11  ;;  %1291 = vmatprep.subr.bf16.mxu1 %v1909_v56  ;;  %1387 = vmatprep.subr.bf16.mxu0 %v1909_v56  ;;  %v300_v19 = vand.u32 4294901760, %v233_v4  ;;  %v304_v23 = vand.u32 4294901760, %v235_v5  ;;  %v1935_v24 = vsub.f32 %v224_v45, %v286_v58  ;;  %v1937_v26 = vsub.f32 %v226_v46, %v290_v59 }
  0x69   : > { %2249 = vst [vmem:[#allocation23_spill] sm:$0xff] %v1933_v17  ;;  %v1939_v27 = vsub.f32 %v229_v51, %v292_v2  ;;  %v302_v28 = vand.u32 4294901760, %v232_v10  ;;  %v1941_v35 = vpack.c.bf16 %v296_v13, %v292_v2  ;;  %v1943_v36 = vsub.f32 %v231_v60, %v296_v13 }
  0x6a   : > { %v1945_v37 = vsub.f32 %v228_v61, %v294_v14  ;;  %v306_v38 = vand.u32 4294901760, %v234_v15  ;;  %v1950_v45 = vpack.c.bf16 %v298_v18, %v294_v14  ;;  %v1952_v46 = vsub.f32 %v230_v3, %v298_v18 }
  0x6b   : > { %2250 = vst [vmem:[#allocation24_spill] sm:$0xff] %v1941_v35  ;;  %1293 = vmatpush1.bf16.msra.mxu1 %v1917_v6  ;;  %1389 = vmatpush1.bf16.msra.mxu0 %v1917_v6  ;;  %v1954_v51 = vpack.c.bf16 %v304_v23, %v300_v19  ;;  %v1958_v53 = vsub.f32 %v233_v4, %v300_v19  ;;  %v308_v54 = vand.u32 4294901760, %v237_v30  ;;  %v312_v55 = vand.u32 4294901760, %v239_v31 }
  0x6c   : > { %2251 = vst [vmem:[#allocation25_spill] sm:$0xff] %v1945_v37  ;;  %2252 = vst [vmem:[#allocation26_spill] sm:$0xff] %v1950_v45  ;;  %1295 = vmatprep.subr.bf16.mxu1 %v1927_v11  ;;  %1391 = vmatprep.subr.bf16.mxu0 %v1927_v11  ;;  %v310_v57 = vand.u32 4294901760, %v236_v32  ;;  %v314_v58 = vand.u32 4294901760, %v238_v39  ;;  %v373_v59 = vand.u32 4294901760, %v1867_v20  ;;  %v385_v60 = vand.u32 4294901760, %v1874_v25 }
  0x6d   : > { %2253 = vst [vmem:[#allocation27_spill] sm:$0xff] %v1952_v46  ;;  %2254 = vst [vmem:[#allocation28_spill] sm:$0xff] %v1954_v51  ;;  %v1962_v61 = vand.u32 4294901760, %v206_v44  ;;  %v1964_v2 = vsub.f32 %v235_v5, %v304_v23  ;;  %v1966_v3 = vpack.c.bf16 %v306_v38, %v302_v28  ;;  %v1968_v13 = vsub.f32 %v232_v10, %v302_v28 }
  0x6e   : > { %2255 = vst [vmem:[#allocation29_spill] sm:$0xff] %v1958_v53  ;;  %v1970_v14 = vsub.f32 %v234_v15, %v306_v38  ;;  %v1974_v4 = vsub.f32 %v237_v30, %v308_v54  ;;  %v374_v18 = vsub.f32 %v1867_v20, %v373_v59  ;;  %v386_v19 = vsub.f32 %v1874_v25, %v385_v60 }
  0x6f   : > { %2256 = vst [vmem:[#allocation30_spill] sm:$0xff] %v1962_v61  ;;  %2257 = vst [vmem:[#allocation31_spill] sm:$0xff] %v1966_v3  ;;  %1297 = vmatpush1.bf16.msra.mxu1 %v1933_v17  ;;  %1393 = vmatpush1.bf16.msra.mxu0 %v1933_v17  ;;  %v379_v0 = vand.u32 4294901760, %v1878_v29  ;;  %v1981_v5 = vpack.c.bf16 %v312_v55, %v308_v54  ;;  %v1984_v10 = vsub.f32 %v206_v44, %v1962_v61 }
  0x70   : > { %1299 = vmatprep.subr.bf16.mxu1 %v1941_v35  ;;  %1395 = vmatprep.subr.bf16.mxu0 %v1941_v35  ;;  %v391_v15 = vand.u32 4294901760, %v1881_v33  ;;  %v397_v23 = vand.u32 4294901760, %v1887_v40  ;;  %v1988_v28 = vsub.f32 %v239_v31, %v312_v55  ;;  %v1990_v30 = vpack.c.bf16 %v314_v58, %v310_v57 }
  0x71   : > { %2258 = vst [vmem:[#allocation32_spill] sm:$0xff] %v1981_v5  ;;  %2259 = vst [vmem:[#allocation33_spill] sm:$0xff] %v1984_v10  ;;  %v380_v38 = vsub.f32 %v1878_v29, %v379_v0  ;;  %v409_v17 = vand.u32 4294901760, %v1889_v41  ;;  %v1994_v11 = vsub.f32 %v236_v32, %v310_v57  ;;  %v351_v54 = vand.u32 4294901760, %v1984_v10 }
  0x72   : > { %2260 = vst [vmem:[#allocation34_spill] sm:$0xff] %v1990_v30  ;;  %v392_v35 = vsub.f32 %v1881_v33, %v391_v15  ;;  %v398_v44 = vsub.f32 %v1887_v40, %v397_v23  ;;  %v375_v31 = vand.u32 4294901760, %v374_v18  ;;  %v387_v55 = vand.u32 4294901760, %v386_v19 }
  0x73   : > { %1301 = vmatpush1.bf16.msra.mxu1 %v1950_v45  ;;  %1397 = vmatpush1.bf16.msra.mxu0 %v1950_v45  ;;  %v381_v6 = vand.u32 4294901760, %v380_v38  ;;  %v410_v56 = vsub.f32 %v1889_v41, %v409_v17  ;;  %v352_v32 = vsub.f32 %v1984_v10, %v351_v54  ;;  %v403_v43 = vand.u32 4294901760, %v1891_v42 }
  0x74   : > { %1303 = vmatprep.subr.bf16.mxu1 %v1954_v51  ;;  %1399 = vmatprep.subr.bf16.mxu0 %v1954_v51  ;;  %v393_v57 = vand.u32 4294901760, %v392_v35  ;;  %v399_v50 = vand.u32 4294901760, %v398_v44  ;;  %v415_v22 = vand.u32 4294901760, %v1895_v47  ;;  %v421_v45 = vand.u32 4294901760, %v1897_v48 }
  0x75   : > { %v411_v34 = vand.u32 4294901760, %v410_v56  ;;  %v433_v18 = vand.u32 4294901760, %v1899_v49  ;;  %v2009_v19 = vsub.f32 %v238_v39, %v314_v58  ;;  %v1406_v38 = vpack.c.bf16 %v385_v60, %v373_v59 }
  0x76   : > { %v404_v21 = vsub.f32 %v1891_v42, %v403_v43  ;;  %v427_v51 = vand.u32 4294901760, %v1905_v52  ;;  %v1310_v35 = vpack.c.bf16 %v387_v55, %v375_v31  ;;  %v1408_v44 = vpack.c.bf16 %v391_v15, %v379_v0 }
  0x77   : > { %1305 = vmatpush1.bf16.msra.mxu1 %v1966_v3  ;;  %1401 = vmatpush1.bf16.msra.mxu0 %v1966_v3  ;;  %v416_v56 = vsub.f32 %v1895_v47, %v415_v22  ;;  %v439_v10 = vand.u32 4294901760, %v1911_v62  ;;  %v353_v39 = vand.u32 4294901760, %v352_v32  ;;  %v1410_v58 = vpack.c.bf16 %v409_v17, %v397_v23 }
  0x78   : > { %1307 = vmatprep.subr.bf16.mxu1 %v1981_v5  ;;  %1403 = vmatprep.subr.bf16.mxu0 %v1981_v5  ;;  %v422_v59 = vsub.f32 %v1897_v48, %v421_v45  ;;  %v434_v60 = vsub.f32 %v1899_v49, %v433_v18  ;;  %v1312_v42 = vpack.c.bf16 %v393_v57, %v381_v6  ;;  %v405_v15 = vand.u32 4294901760, %v404_v21 }
  0x79   : > { %v1314_v61 = vpack.c.bf16 %v411_v34, %v399_v50  ;;  %v428_v3 = vsub.f32 %v1905_v52, %v427_v51  ;;  %v440_v0 = vsub.f32 %v1911_v62, %v439_v10  ;;  %v417_v31 = vand.u32 4294901760, %v416_v56 }
  0x7a   : > { %v445_v55 = vand.u32 4294901760, %v1913_v63  ;;  %v457_v47 = vand.u32 4294901760, %v1915_v1  ;;  %v1412_v17 = vpack.c.bf16 %v415_v22, %v403_v43  ;;  %v423_v23 = vand.u32 4294901760, %v422_v59 }
  0x7b   : > { %1309 = vmatpush1.bf16.msra.mxu1 %v1990_v30  ;;  %1405 = vmatpush1.bf16.msra.mxu0 %v1990_v30  ;;  %v1414_v32 = vpack.c.bf16 %v433_v18, %v421_v45  ;;  %v451_v6 = vand.u32 4294901760, %v1919_v7  ;;  %v435_v34 = vand.u32 4294901760, %v434_v60  ;;  %v463_v57 = vand.u32 4294901760, %v1921_v8 }
  0x7c   : > { %1311 = vmatprep.subr.bf16.mxu1 %v1310_v35  ;;  %1407 = vmatprep.subr.bf16.mxu0 %v1406_v38  ;;  %v446_v50 = vsub.f32 %v1913_v63, %v445_v55  ;;  %v458_v21 = vsub.f32 %v1915_v1, %v457_v47  ;;  %v429_v56 = vand.u32 4294901760, %v428_v3  ;;  %v441_v5 = vand.u32 4294901760, %v440_v0 }
  0x7d   : > { %v1416_v62 = vpack.c.bf16 %v439_v10, %v427_v51  ;;  %v469_v52 = vand.u32 4294901760, %v1923_v9  ;;  %v1316_v22 = vpack.c.bf16 %v417_v31, %v405_v15  ;;  %v452_v43 = vsub.f32 %v1919_v7, %v451_v6 }
  0x7e   : > { %354 = vmatmul.mubr.f32.vlgmr.msra.gmra.mrb[0].mxu1 %v353_v39  ;;  %855 = vmatmul.mubr.f32.vlgmr.msra.gmra.mrb[0].mxu0 %v351_v54  ;;  %v464_v45 = vsub.f32 %v1921_v8, %v463_v57  ;;  %v447_v18 = vand.u32 4294901760, %v446_v50  ;;  %v459_v38 = vand.u32 4294901760, %v458_v21  ;;  %v481_v35 = vand.u32 4294901760, %v1929_v12 }
  0x7f   : > { %1313 = vmatpush1.bf16.msra.mxu1 %v1312_v42  ;;  %1409 = vmatpush1.bf16.msra.mxu0 %v1408_v44  ;;  %v475_v59 = vand.u32 4294901760, %v1935_v24  ;;  %v1318_v51 = vpack.c.bf16 %v435_v34, %v423_v23  ;;  %v470_v3 = vsub.f32 %v1923_v9, %v469_v52  ;;  %v487_v10 = vand.u32 4294901760, %v1937_v26 }
  0x80   : > { %1315 = vmatprep.subr.bf16.mxu1 %v1314_v61  ;;  %1411 = vmatprep.subr.bf16.mxu0 %v1410_v58  ;;  %v493_v54 = vand.u32 4294901760, %v1939_v27  ;;  %v1320_v39 = vpack.c.bf16 %v441_v5, %v429_v56  ;;  %v482_v60 = vsub.f32 %v1929_v12, %v481_v35  ;;  %v2261_v44 = vmov 0.0  }
  0x81   : > { %v476_v42 = vsub.f32 %v1935_v24, %v475_v59  ;;  %359 = vmatprep.mubr.f32.mxu1 %v2261_v44  ;;  %860 = vmatprep.mubr.f32.mxu0 %v2261_v44  ;;  %v1418_v0 = vpack.c.bf16 %v457_v47, %v445_v55  ;;  %v453_v15 = vand.u32 4294901760, %v452_v43  ;;  %v465_v61 = vand.u32 4294901760, %v464_v45 }
  0x82   : > { %v488_v58 = vsub.f32 %v1937_v26, %v487_v10  ;;  %v1322_v31 = vpack.c.bf16 %v459_v38, %v447_v18  ;;  %v494_v23 = vsub.f32 %v1939_v27, %v493_v54  ;;  %v505_v5 = vand.u32 4294901760, %v1943_v36 }
  0x83   : > { %1317 = vmatpush1.bf16.msra.mxu1 %v1316_v22  ;;  %1413 = vmatpush1.bf16.msra.mxu0 %v1412_v17  ;;  %v499_v34 = vand.u32 4294901760, %v1945_v37  ;;  %v471_v50 = vand.u32 4294901760, %v470_v3  ;;  %v483_v21 = vand.u32 4294901760, %v482_v60  ;;  %v511_v56 = vand.u32 4294901760, %v1952_v46 }
  0x84   : > { %1319 = vmatprep.subr.bf16.mxu1 %v1318_v51  ;;  %1415 = vmatprep.subr.bf16.mxu0 %v1414_v32  ;;  %v517_v47 = vand.u32 4294901760, %v1958_v53  ;;  %v1420_v55 = vpack.c.bf16 %v463_v57, %v451_v6  ;;  %v477_v43 = vand.u32 4294901760, %v476_v42  ;;  %v489_v45 = vand.u32 4294901760, %v488_v58  ;;  %v207_v58 = vld [vmem:[%s1853_s9 + $0x8] sm:$0xff] }
  0x85   : > { %v506_v17 = vsub.f32 %v1943_v36, %v505_v5  ;;  %v1324_v22 = vpack.c.bf16 %v465_v61, %v453_v15  ;;  %v500_v18 = vsub.f32 %v1945_v37, %v499_v34  ;;  %v512_v38 = vsub.f32 %v1952_v46, %v511_v56 }
  0x86   : > { %v518_v51 = vsub.f32 %v1958_v53, %v517_v47  ;;  %v495_v32 = vand.u32 4294901760, %v494_v23  ;;  %v529_v60 = vand.u32 4294901760, %v1964_v2  ;;  %v523_v6 = vand.u32 4294901760, %v1968_v13 }
  0x87   : > { %1321 = vmatpush1.bf16.msra.mxu1 %v1320_v39  ;;  %1417 = vmatpush1.bf16.msra.mxu0 %v1416_v62  ;;  %v507_v3 = vand.u32 4294901760, %v506_v17  ;;  %v1326_v57 = vpack.c.bf16 %v483_v21, %v471_v50  ;;  %v1422_v42 = vpack.c.bf16 %v481_v35, %v469_v52  ;;  %v535_v15 = vand.u32 4294901760, %v1970_v14 }
  0x88   : > { %1323 = vmatprep.subr.bf16.mxu1 %v1322_v31  ;;  %1419 = vmatprep.subr.bf16.mxu0 %v1418_v0  ;;  %v541_v61 = vand.u32 4294901760, %v1974_v4  ;;  %v1328_v30 = vpack.c.bf16 %v489_v45, %v477_v43  ;;  %v1424_v46 = vpack.c.bf16 %v487_v10, %v475_v59  ;;  %v1426_v53 = vpack.c.bf16 %v505_v5, %v493_v54 }
  0x89   : > { %v530_v62 = vsub.f32 %v1964_v2, %v529_v60  ;;  %v501_v39 = vand.u32 4294901760, %v500_v18  ;;  %v513_v23 = vand.u32 4294901760, %v512_v38  ;;  %v519_v17 = vand.u32 4294901760, %v518_v51 }
  0x8a   : > { %v524_v37 = vsub.f32 %v1968_v13, %v523_v6  ;;  %v1330_v0 = vpack.c.bf16 %v507_v3, %v495_v32  ;;  %v536_v52 = vsub.f32 %v1970_v14, %v535_v15  ;;  %v553_v35 = vand.u32 4294901760, %v1988_v28 }
  0x8b   : > { %1325 = vmatpush1.bf16.msra.mxu1 %v1324_v22  ;;  %1421 = vmatpush1.bf16.msra.mxu0 %v1420_v55  ;;  %v2062_v31 = vand.u32 4294901760, %v207_v58  ;;  %v531_v59 = vand.u32 4294901760, %v530_v62  ;;  %v542_v10 = vsub.f32 %v1974_v4, %v541_v61  ;;  %v547_v54 = vand.u32 4294901760, %v1994_v11 }
  0x8c   : > { %1327 = vmatprep.subr.bf16.mxu1 %v1326_v57  ;;  %1423 = vmatprep.subr.bf16.mxu0 %v1422_v42  ;;  %v559_v5 = vand.u32 4294901760, %v2009_v19  ;;  %v554_v50 = vsub.f32 %v1988_v28, %v553_v35  ;;  %v1332_v55 = vpack.c.bf16 %v513_v23, %v501_v39  ;;  %v1428_v43 = vpack.c.bf16 %v511_v56, %v499_v34  ;;  %v2262_v39 = vld [vmem:[#allocation30_spill] sm:$0xff]  ;;  %v2263_v23 = vld [vmem:[#allocation11_spill] sm:$0xff] }
  0x8d   : > { %v2069_v21 = vsub.f32 %v207_v58, %v2062_v31  ;;  %v525_v45 = vand.u32 4294901760, %v524_v37  ;;  %v537_v22 = vand.u32 4294901760, %v536_v52  ;;  %v548_v38 = vsub.f32 %v1994_v11, %v547_v54  ;;  %v2270_v52 = vld [vmem:[#allocation15_spill] sm:$0xff] }
  0x8e   : > { %v560_v51 = vsub.f32 %v2009_v19, %v559_v5  ;;  %v1334_v32 = vpack.c.bf16 %v531_v59, %v519_v17  ;;  %v1430_v3 = vpack.c.bf16 %v529_v60, %v517_v47  ;;  %v543_v57 = vand.u32 4294901760, %v542_v10  ;;  %v2264_v17 = vld [vmem:[#allocation14_spill] sm:$0xff]  ;;  %v2272_v59 = vld [vmem:[#allocation19_spill] sm:$0xff] }
  0x8f   : > { %1329 = vmatpush1.bf16.msra.mxu1 %v1328_v30  ;;  %1425 = vmatpush1.bf16.msra.mxu0 %v1424_v46  ;;  %v362_v18 = vand.u32 4294901760, %v2069_v21  ;;  %v555_v42 = vand.u32 4294901760, %v554_v50  ;;  %v1432_v34 = vpack.c.bf16 %v535_v15, %v523_v6  ;;  %v1336_v37 = vpack.c.bf16 %v537_v22, %v525_v45  ;;  %v2277_v50 = vld [vmem:[#allocation27_spill] sm:$0xff] }
  0x90   : > { %1331 = vmatprep.subr.bf16.mxu1 %v1330_v0  ;;  %1427 = vmatprep.subr.bf16.mxu0 %v1426_v53  ;;  %v549_v30 = vand.u32 4294901760, %v548_v38  ;;  %v561_v56 = vand.u32 4294901760, %v560_v51  ;;  %v1434_v53 = vpack.c.bf16 %v553_v35, %v541_v61  ;;  %v1436_v60 = vpack.c.bf16 %v559_v5, %v547_v54  ;;  %v2266_v0 = vld [vmem:[#allocation12_spill] sm:$0xff]  ;;  %v2273_v54 = vld [vmem:[#allocation21_spill] sm:$0xff]  ;;  %v2282_v45 = vld [vmem:[#allocation31_spill] sm:$0xff] }
  0x91   : > { %v363_v58 = vsub.f32 %v2069_v21, %v362_v18  ;;  %864 = vmatmul.mubr.f32.gmra.mrb[2].mxu0 %v362_v18  ;;  %v1338_v62 = vpack.c.bf16 %v555_v42, %v543_v57  ;;  %v1342_v6 = vpack.c.bf16 %v1874_v25, %v1867_v20  ;;  %v1344_v15 = vpack.c.bf16 %v1881_v33, %v1878_v29  ;;  %v2265_v20 = vld [vmem:[#allocation16_spill] sm:$0xff]  ;;  %v2268_v33 = vld [vmem:[#allocation18_spill] sm:$0xff] }
  0x92   : > { %1030 = vmatprep.mubr.f32.mxu0 %v2261_v44  ;;  %v1340_v47 = vpack.c.bf16 %v561_v56, %v549_v30  ;;  %v1346_v61 = vpack.c.bf16 %v1889_v41, %v1887_v40  ;;  %v1348_v25 = vpack.c.bf16 %v2265_v20, %v2264_v17  ;;  %v1350_v29 = vpack.c.bf16 %v1899_v49, %v1897_v48  ;;  %v2269_v40 = vld [vmem:[#allocation20_spill] sm:$0xff]  ;;  %v2271_v49 = vld [vmem:[#allocation17_spill] sm:$0xff]  ;;  %v2284_v18 = vld [vmem:[#allocation34_spill] sm:$0xff] }
  0x93   : > { %1333 = vmatpush1.bf16.msra.mxu1 %v1332_v55  ;;  %1429 = vmatpush1.bf16.msra.mxu0 %v1428_v43  ;;  %v364_v46 = vand.u32 4294901760, %v363_v58  ;;  %v1352_v41 = vpack.c.bf16 %v2269_v40, %v2268_v33  ;;  %v1354_v48 = vpack.c.bf16 %v1915_v1, %v1913_v63  ;;  %v1356_v35 = vpack.c.bf16 %v1921_v8, %v1919_v7  ;;  %v2274_v1 = vld [vmem:[#allocation22_spill] sm:$0xff]  ;;  %v2275_v7 = vld [vmem:[#allocation23_spill] sm:$0xff]  ;;  %v2276_v8 = vld [vmem:[#allocation25_spill] sm:$0xff] }
  0x94   : > { %1335 = vmatprep.subr.bf16.mxu1 %v1334_v32  ;;  %1431 = vmatprep.subr.bf16.mxu0 %v1430_v3  ;;  %v1358_v10 = vpack.c.bf16 %v1929_v12, %v1923_v9  ;;  %v1360_v63 = vpack.c.bf16 %v1937_v26, %v1935_v24  ;;  %v1362_v5 = vpack.c.bf16 %v1943_v36, %v1939_v27  ;;  %v2278_v9 = vld [vmem:[#allocation24_spill] sm:$0xff]  ;;  %v2279_v12 = vld [vmem:[#allocation29_spill] sm:$0xff]  ;;  %v2280_v24 = vld [vmem:[#allocation26_spill] sm:$0xff] }
  0x95   : > { %365 = vmatmul.mubr.f32.gmra.mrb[2].mxu1 %v364_v46  ;;  %v1364_v55 = vpack.c.bf16 %v2277_v50, %v2276_v8  ;;  %v1366_v43 = vpack.c.bf16 %v1964_v2, %v2279_v12  ;;  %v1368_v26 = vpack.c.bf16 %v1970_v14, %v1968_v13  ;;  %v2281_v27 = vld [vmem:[#allocation28_spill] sm:$0xff]  ;;  %v1370_v36 = vpack.c.bf16 %v1988_v28, %v1974_v4  ;;  %v2285_v13 = vld [vmem:[#allocation33_spill] sm:$0xff]  ;;  %v240_v28 = vld [vmem:[%s2194_s2] sm:$0x3] }
  0x96   : > { %595 = vmatprep.mubr.f32.mxu1 %v2261_v44  ;;  %v1372_v22 = vpack.c.bf16 %v2009_v19, %v1994_v11  ;;  %v2283_v2 = vld [vmem:[#allocation32_spill] sm:$0xff]  ;;  %v242_v11 = vlaneseq }
  0x97   : > { %1337 = vmatpush1.bf16.msra.mxu1 %v1336_v37  ;;  %1433 = vmatpush1.bf16.msra.mxu0 %v1432_v34 }
  0x98   : > { %1339 = vmatprep.subr.bf16.mxu1 %v1338_v62  ;;  %1435 = vmatprep.subr.bf16.mxu0 %v1434_v53  ;;  %v243_v14 = vshrl.u32 %v242_v11, 7 }
  0x9a   : > { %v244_v4 = vsub.s32 0, %v243_v14  ;;  %v248_v19 = vsub.s32 1, %v243_v14 }
  0x9b   : > { %1341 = vmatpush1.bf16.msra.mxu1 %v1340_v47  ;;  %1437 = vmatpush1.bf16.msra.mxu0 %v1436_v60 }
  0x9c   : > { %1343 = vmatprep.subr.bf16.mxu1 %v1342_v6  ;;  %1439 = vmatprep.subr.bf16.mxu0 %v1865_v16  ;;  %v2267_v16 = vld [vmem:[#allocation13_spill] sm:$0xff]  ;;  %v245_v38 = vrot.slane %v240_v28, %v244_v4  ;;  %v249_v51 = vrot.slane %v240_v28, %v248_v19 }
  0x9e   : > { %597 = vmatmul.mubr.f32.vlgmr.msra.gmra.mrb[0].mxu1 %v2262_v39  ;;  %1032 = vmatmul.mubr.f32.vlgmr.msra.gmra.mrb[0].mxu0 %v2262_v39 }
  0x9f   : > { %1345 = vmatpush1.bf16.msra.mxu1 %v1344_v15  ;;  %1441 = vmatpush1.bf16.msra.mxu0 %v2263_v23 }
  0xa0   : > { %1347 = vmatprep.subr.bf16.mxu1 %v1346_v61  ;;  %1443 = vmatprep.subr.bf16.mxu0 %v2266_v0 }
  0xa1   : > { %602 = vmatprep.mubr.f32.mxu1 %v2261_v44  ;;  %1037 = vmatprep.mubr.f32.mxu0 %v2261_v44 }
  0xa2   : > { %604 = vmatmul.mubr.f32.gmra.mrb[2].mxu1 %v2062_v31  ;;  %1039 = vmatmul.mubr.f32.gmra.mrb[2].mxu0 %v2062_v31 }
  0xa3   : > { %1349 = vmatpush1.bf16.msra.mxu1 %v1348_v25  ;;  %1445 = vmatpush1.bf16.msra.mxu0 %v2267_v16 }
  0xa4   : > { %1351 = vmatprep.subr.bf16.mxu1 %v1350_v29  ;;  %1447 = vmatprep.subr.bf16.mxu0 %v2270_v52 }
  0xa5   : > { %738 = vmatprep.mubr.f32.mxu1 %v2261_v44  ;;  %1141 = vmatprep.mubr.f32.mxu0 %v2261_v44 }
  0xa7   : > { %1353 = vmatpush1.bf16.msra.mxu1 %v1352_v41  ;;  %1449 = vmatpush1.bf16.msra.mxu0 %v2271_v49 }
  0xa8   : > { %1355 = vmatprep.subr.bf16.mxu1 %v1354_v48  ;;  %1451 = vmatprep.subr.bf16.mxu0 %v2272_v59 }
  0xab   : > { %1357 = vmatpush1.bf16.msra.mxu1 %v1356_v35  ;;  %1453 = vmatpush1.bf16.msra.mxu0 %v2273_v54 }
  0xac   : > { %1359 = vmatprep.subr.bf16.mxu1 %v1358_v10  ;;  %1455 = vmatprep.subr.bf16.mxu0 %v2274_v1 }
  0xaf   : > { %1361 = vmatpush1.bf16.msra.mxu1 %v1360_v63  ;;  %1457 = vmatpush1.bf16.msra.mxu0 %v2275_v7 }
  0xb0   : > { %1363 = vmatprep.subr.bf16.mxu1 %v1362_v5  ;;  %1459 = vmatprep.subr.bf16.mxu0 %v2278_v9 }
  0xb3   : > { %1365 = vmatpush1.bf16.msra.mxu1 %v1364_v55  ;;  %1461 = vmatpush1.bf16.msra.mxu0 %v2280_v24 }
  0xb4   : > { %1367 = vmatprep.subr.bf16.mxu1 %v1366_v43  ;;  %1463 = vmatprep.subr.bf16.mxu0 %v2281_v27 }
  0xb7   : > { %1369 = vmatpush1.bf16.msra.mxu1 %v1368_v26  ;;  %1465 = vmatpush1.bf16.msra.mxu0 %v2282_v45 }
  0xb8   : > { %1371 = vmatprep.subr.bf16.mxu1 %v1370_v36  ;;  %1467 = vmatprep.subr.bf16.mxu0 %v2283_v2 }
  0xbb   : > { %1373 = vmatpush1.bf16.msra.mxu1 %v1372_v22  ;;  %1469 = vmatpush1.bf16.msra.mxu0 %v2284_v18 }
  0xbe   : > { %741 = vmatmul.mubr.f32.vlgmr.msra.gmra.mrb[0].mxu1 %v2285_v13  ;;  %1143 = vmatmul.mubr.f32.vlgmr.msra.gmra.mrb[0].mxu0 %v2262_v39 }
  0xbf   : > { %746 = vmatprep.mubr.f32.mxu1 %v2261_v44  ;;  %1148 = vmatprep.mubr.f32.mxu0 %v2261_v44 }
  0xc2   : > { %749 = vmatmul.mubr.f32.gmra.mrb[2].mxu1 %v2069_v21  ;;  %1150 = vmatmul.mubr.f32.gmra.mrb[2].mxu0 %v2062_v31 }
 0x191   : > { %v742_v32 = vpop.f32.mrb[0].mxu1  ;;  %v1144_v3 = vpop.f32.mrb[0].mxu0 }
 0x192   : > { %v1470_v57 = vadd.f32 %v742_v32, %v245_v38  ;;  %v744_v44 = vpop.f32.mrb[1].mxu1  ;;  %v1146_v42 = vpop.f32.mrb[1].mxu0 }
 0x193   : > { %v1472_v21 = vadd.f32 %v744_v44, %v249_v51 }
 0x194   : > { %v1471_v58 = vadd.f32 %v1470_v57, %v1144_v3 }
 0x195   : > { %v1473_v31 = vadd.f32 %v1472_v21, %v1146_v42  ;;  %v750_v34 = vpop.f32.mrb[2].mxu1  ;;  %v1151_v37 = vpop.f32.mrb[2].mxu0 }
 0x196   : > { %1156 = vst [vmem:[%s203_s25] sm:$0xff] %v1471_v58  ;;  %v1474_v46 = vadd.f32 %v750_v34, %v245_v38  ;;  %v752_v30 = vpop.f32.mrb[3].mxu1  ;;  %v1153_v56 = vpop.f32.mrb[3].mxu0 }
 0x197   : > { %1157 = vst [vmem:[%s203_s25 + $0x8] sm:$0xff] %v1473_v31  ;;  %v1476_v62 = vadd.f32 %v752_v30, %v249_v51 }
 0x198   : > { %v1475_v53 = vadd.f32 %v1474_v46, %v1151_v37 }
 0x199   : > { %v1477_v47 = vadd.f32 %v1476_v62, %v1153_v56 }
 0x19a   : > { %1158 = vst [vmem:[%s203_s25 + $0x10] sm:$0xff] %v1475_v53 }
 0x19b   : > { %1159 = vst [vmem:[%s203_s25 + $0x18] sm:$0xff] %v1477_v47 }
 0x19c   : > { %1629 = shalt.err (!%p1626_p7)
}
 0x19d   : > { %s1630_s22 = scalar_lea.hbm %s2149_s27, 512  ;;  %s1634_s9 = scalar_lea.hbm %s2195_s3, 4096 }
 0x19e   : > { %p1631_p9 = scmp.ne.s32.totalorder %s2149_s27, %s1630_s22  ;;  %p1635_p5 = scmp.lt.u32.totalorder %s2149_s27, %s2195_s3 }
 0x19f   : > { %p1636_p10 = scmp.lt.u32.totalorder %s1634_s9, %s1630_s22  ;;  %p1638_p1 = scmp.lt.u32.totalorder %s1630_s22, %s2149_s27 }
 0x1a0   : > { %p1632_p11 = pnand %p1631_p9, %p1801_p12 }
 0x1a1   : > { %p1637_p2 = por %p1636_p10, %p1635_p5 }
 0x1a2   : > { %p1633_p0 = pneg %p1632_p11 }
 0x1a3   : > { %p1639_p4 = por %p1638_p1, %p1637_p2 }
 0x1a5   : > { %p1640_p6 = pnand %p1639_p4, %p1633_p0 }
 0x1a7   : > { %1643 = shalt.err (!%p1640_p6)
}
 0x1a8   : > { %s1696_s4 = smov 256   ;;  %s1697_s25 = smov 16  }
 0x1a9   : > { %1500 = dma.vmem_to_hbm [thread:$0]  (%p1801_p12), %s2144_s26, 512, %s2149_s27, %s1161_s16, %s1696_s4, %s1696_s4, %s1697_s25  }
 0x1aa PF: > { %p1517_p8 = scmp.ge.s32.totalorder %s1686_s15, 2  ;;  %s1190_s5 = sand.u32 1, %s1674_s12  }
 0x1ab   : > { %p2286_p13 = scmp.ne.s32.totalorder %s2227_s19, 0  ;;  %s1191_s10 = scalar_lea.sflag [#allocation4], %s1190_s5 }
 0x1ad   : > { %p1511_p3 = pnand %p1517_p8, %p2286_p13 }
 0x1af   : > { %1669 = dma.done.wait (!%p1511_p3), %s1191_s10, 512  }
 0x1b0   : > { %1671 = vsyncadd (!%p1511_p3), %s1191_s10, 4294966784  ;;  %p17_p7 = scmp.ge.s32.totalorder %s1771_s24, 10   ;;  %s2287_s12 = smov %s1678_s13 }
 0x1b1   : > { %s2288_s13 = smov %s1682_s14  ;;  %s2289_s14 = smov %s1797_s17 }
 0x1b2   : > { %s2290_s15 = smov %s1771_s24  ;;  %19 = sbr.rel (!%p17_p7) target bundleno = 6 (0x6), region = 81 }
 0x1b9   :  { %1196 = vsyncpa [#allocation3], 1 }
 0x1ba   :  { %1198 = vsyncpa [#allocation3 + $0x1], 1 }
 0x1bb   :  { %1199 = vsyncpa [#allocation6], 1 }
 0x1bc   :  { %1200 = vsyncpa [#allocation4], 1 }
 0x1bd   :  { %1202 = vsyncpa [#allocation4 + $0x1], 1 }

</bundles_post_ra>
